<compile_context>
chip_gen: v5e
topology: v5e:2x2
jax: 0.10.0
libtpu: 0.0.40
codegen_flags: <defaults>
</compile_context>

<pallas_src>
import math
import functools

import jax
import jax.numpy as jnp
from jax.experimental import pallas as pl
from jax.experimental.pallas import tpu as pltpu


def _sab_kernel(x_ref, bias_ref, gamma_ref, beta_ref,
                wqkv_ref, bqkv_ref, wo_ref, bo_ref,
                out_ref, *attn_refs, n_head, mxu_dtype):
    attn_ref = attn_refs[0] if attn_refs else None
    Bb, S, D = x_ref.shape
    H = n_head
    d_k = D // H
    R = Bb * S

    # ---- LayerNorm over d_model (eps = 1e-5, matching nn.LayerNorm), f32 ----
    # Row-wise work runs on a flattened (Bb*S, D) slab.
    x = x_ref[...].astype(jnp.float32).reshape(R, D)
    mean = jnp.mean(x, axis=-1, keepdims=True)
    xc = x - mean
    var = jnp.mean(xc * xc, axis=-1, keepdims=True)
    xn = xc * jax.lax.rsqrt(var + 1e-5) * gamma_ref[...] + beta_ref[...]
    del x, xc, mean, var  # x_ref is re-read at the residual add

    # ---- fused QKV projection: one (R, D) x (D, 3D) MXU matmul ----
    qkv = jnp.dot(xn.astype(mxu_dtype), wqkv_ref[...],
                  preferred_element_type=jnp.float32) + bqkv_ref[...]
    del xn

    # TODO(synk): replace reshape+transpose head split/merge with
    # pltpu.einshape / head-major weight packing and verify in the Mosaic dump
    # that no extra VMEM relayout copies are materialized (minor dim d_k < 128).
    def to_heads(t, scale=None):              # (R, D) -> (Bb*H, S, d_k)
        if scale is not None:
            t = t * scale
        t = t.reshape(Bb, S, H, d_k)
        t = jnp.transpose(t, (0, 2, 1, 3))
        return t.reshape(Bb * H, S, d_k).astype(mxu_dtype)

    # 1/sqrt(d_k) folded into Q: scaled once over R*D elements instead of the
    # H*S^2 score tensor.
    qh = to_heads(qkv[:, :D], scale=jnp.float32(1.0 / math.sqrt(d_k)))
    kh = to_heads(qkv[:, D:2 * D])
    vh = to_heads(qkv[:, 2 * D:])
    del qkv

    # ---- scores for all (batch, head) pairs in one batched einsum ----
    s = jnp.einsum('bqd,bkd->bqk', qh, kh,
                   preferred_element_type=jnp.float32).reshape(Bb, H, S, S)

    # Additive mask bias (precomputed in the wrapper, bf16): one broadcast add
    # over heads.  Masked logits become s - 60000 rather than exactly -60000;
    # after max-subtraction the masked exp underflows to 0 either way.
    s = s + bias_ref[...].astype(jnp.float32)[:, None, :, :]

    # ---- softmax over keys (f32); the divide goes to the EUP (approx recip) --
    s = s - jnp.max(s, axis=-1, keepdims=True)
    s = jnp.exp(s)
    p = s * pl.reciprocal(jnp.sum(s, axis=-1, keepdims=True), approx=True)
    del s

    # Attention probabilities stored directly in (Bb, H, S, S) layout: no
    # in-kernel transpose, no wrapper-side transpose over HBM.
    if attn_ref is not None:
        attn_ref[...] = p.astype(attn_ref.dtype)

    # ---- context for all (batch, head) pairs ----
    ctx = jnp.einsum('bqk,bkd->bqd',
                     p.reshape(Bb * H, S, S).astype(mxu_dtype), vh,
                     preferred_element_type=jnp.float32)
    ctx = jnp.transpose(ctx.reshape(Bb, H, S, d_k), (0, 2, 1, 3)).reshape(R, D)

    # ---- output projection + residual (dropout = identity at inference) ----
    y = jnp.dot(ctx.astype(mxu_dtype), wo_ref[...],
                preferred_element_type=jnp.float32) + bo_ref[...]
    out_ref[...] = (y.reshape(Bb, S, D)
                    + x_ref[...].astype(jnp.float32)).astype(out_ref.dtype)


def _pick_b_blk(B, S, D, H, mxu_bytes, attn_bytes, vmem_budget):
    """VMEM-aware batch-block selection.

    Keeps grid >= min(B, 4) steps (prefers an even count for megacore) and
    sizes b_blk from a per-step VMEM model that includes the double-buffered
    I/O blocks, the resident (double-buffered) weights and ~3 live f32 copies
    of the (Bb, H, S, S) score tensor.
    """
    # Pallas double-buffers every input, including constant-index weights.
    # TODO(synk): for large D, use pipeline_mode=pl.Buffered(1) (or a one-time
    # manual copy from pl.ANY) on wqkv/wo so they are not double-buffered.
    weights = 2 * ((D * 3 * D + D * D) * mxu_bytes + 6 * D * 4)

    def step_bytes(bb):
        rows = bb * S
        score = bb * H * S * S
        b = weights
        b += 2 * rows * D * 4          # x in   (double buffered)
        b += 2 * bb * S * S * 2        # mask bias in (bf16)
        b += 2 * rows * D * 4          # out
        b += 2 * score * attn_bytes    # attn out (0 if not returned)
        b += 3 * score * 4             # s / exp / p f32 intermediates
        b += 8 * rows * D * 4          # qkv + per-head copies + ctx slabs
        return b

    min_grid = min(B, 4)
    divs = [d for d in range(1, B + 1) if B % d == 0]
    cands = [bb for bb in divs
             if B // bb >= min_grid and step_bytes(bb) <= vmem_budget]
    if not cands:
        # TODO(synk): for long S, no b_blk fits -- switch to a flash-style
        # key-block inner loop (online softmax) instead of materializing the
        # full (Bb, H, S, S) scores.
        return 1
    even = [bb for bb in cands if (B // bb) % 2 == 0]
    return max(even) if even else max(cands)


def self_attention_block(x, mask, params, n_head, *,
                         mxu_dtype=jnp.bfloat16,
                         attn_dtype=jnp.bfloat16,
                         return_attn=True,
                         b_blk=None):
    """Forward pass of SelfAttentionBlock (eval mode).

    Returns (out, attn) when return_attn=True (attn in (B, H, S, S) layout,
    attn_dtype, bf16 by default), else just out.
    """
    B, S, D = x.shape
    H = n_head
    assert D % H == 0
    (gamma, beta, wq, bq, wk, bk, wv, bv, wo, bo) = params

    # Fuse the three projections into one (D, 3D) weight / (1, 3D) bias.
    wqkv = jnp.concatenate([wq, wk, wv], axis=1).astype(mxu_dtype)
    bqkv = jnp.concatenate([bq, bk, bv], axis=0).reshape(1, 3 * D)
    bqkv = bqkv.astype(jnp.float32)
    wo_m = wo.astype(mxu_dtype)

    # mask -> additive bias in bf16: half the DMA of an f32 mask; the in-kernel
    # masking is then a single broadcast add over the (Bb, H, S, S) scores.
    mask_bias = jnp.where(mask == 0, jnp.float32(-60000.0),
                          jnp.float32(0.0)).astype(jnp.bfloat16)

    # Per-generation VMEM budget: ~48 MiB on v7x (64 MiB physical), ~96 MiB on
    # v5e/v6e (128 MiB physical).
    try:
        vmem_cap = int(pltpu.get_tpu_info().vmem_capacity_bytes)
    except Exception:
        vmem_cap = 64 * 1024 * 1024
    vmem_budget = vmem_cap * 3 // 4

    mxu_bytes = jnp.dtype(mxu_dtype).itemsize
    attn_bytes = jnp.dtype(attn_dtype).itemsize if return_attn else 0
    if b_blk is None:
        b_blk = _pick_b_blk(B, S, D, H, mxu_bytes, attn_bytes, vmem_budget)
    assert B % b_blk == 0
    grid = (B // b_blk,)

    kernel = functools.partial(_sab_kernel, n_head=H, mxu_dtype=mxu_dtype)

    full = lambda i: (0, 0)   # resident, un-tiled parameters
    in_specs = [
        pl.BlockSpec((b_blk, S, D), lambda i: (i, 0, 0)),      # x
        pl.BlockSpec((b_blk, S, S), lambda i: (i, 0, 0)),      # mask bias
        pl.BlockSpec((1, D), full),                            # gamma
        pl.BlockSpec((1, D), full),                            # beta
        pl.BlockSpec((D, 3 * D), full),                        # wqkv
        pl.BlockSpec((1, 3 * D), full),                        # bqkv
        pl.BlockSpec((D, D), full),                            # wo
        pl.BlockSpec((1, D), full),                            # bo
    ]
    if return_attn:
        out_specs = (pl.BlockSpec((b_blk, S, D), lambda i: (i, 0, 0)),
                     pl.BlockSpec((b_blk, H, S, S), lambda i: (i, 0, 0, 0)))
        out_shape = (jax.ShapeDtypeStruct((B, S, D), x.dtype),
                     jax.ShapeDtypeStruct((B, H, S, S), attn_dtype))
    else:
        out_specs = pl.BlockSpec((b_blk, S, D), lambda i: (i, 0, 0))
        out_shape = jax.ShapeDtypeStruct((B, S, D), x.dtype)

    grid_spec = pltpu.PrefetchScalarGridSpec(
        num_scalar_prefetch=0,
        grid=grid,
        in_specs=in_specs,
        out_specs=out_specs,
    )

    result = pl.pallas_call(
        kernel,
        grid_spec=grid_spec,
        out_shape=out_shape,
        compiler_params=pltpu.CompilerParams(
            dimension_semantics=("parallel",),
            vmem_limit_bytes=int(vmem_budget),
        ),
    )(x, mask_bias,
      gamma.reshape(1, D).astype(jnp.float32),
      beta.reshape(1, D).astype(jnp.float32),
      wqkv, bqkv, wo_m, bo.reshape(1, D).astype(jnp.float32))

    if return_attn:
        out, attn = result
        return out, attn
    return result


def _reference(x, mask, params, n_head):
    """Pure-JAX reference matching the PyTorch module (eval mode)."""
    B, S, D = x.shape
    d_k = D // n_head
    (gamma, beta, wq, bq, wk, bk, wv, bv, wo, bo) = params
    mean = x.mean(-1, keepdims=True)
    var = ((x - mean) ** 2).mean(-1, keepdims=True)
    xn = (x - mean) / jnp.sqrt(var + 1e-5) * gamma + beta
    q = (xn @ wq + bq).reshape(B, S, n_head, d_k).transpose(0, 2, 1, 3)
    k = (xn @ wk + bk).reshape(B, S, n_head, d_k).transpose(0, 2, 1, 3)
    v = (xn @ wv + bv).reshape(B, S, n_head, d_k).transpose(0, 2, 1, 3)
    scores = jnp.einsum("bhqd,bhkd->bhqk", q, k) / math.sqrt(d_k)
    scores = jnp.where(mask[:, None, :, :] == 0, -60000.0, scores)
    attn = jax.nn.softmax(scores, axis=-1)
    ctx = jnp.einsum("bhqk,bhkd->bhqd", attn, v)
    ctx = ctx.transpose(0, 2, 1, 3).reshape(B, S, D)
    out = ctx @ wo + bo
    return out + x, attn


def _make_params(key, d_model):
    ks = jax.random.split(key, 4)
    scale = 1.0 / math.sqrt(d_model)
    gamma = jnp.ones((d_model,), jnp.float32)
    beta = jnp.zeros((d_model,), jnp.float32)

    def lin(k):
        kw, kb = jax.random.split(k)
        w = jax.random.uniform(kw, (d_model, d_model), jnp.float32, -scale, scale)
        b = jax.random.uniform(kb, (d_model,), jnp.float32, -scale, scale)
        return w, b

    wq, bq = lin(ks[0]); wk, bk = lin(ks[1]); wv, bv = lin(ks[2]); wo, bo = lin(ks[3])
    return (gamma, beta, wq, bq, wk, bk, wv, bv, wo, bo)


if __name__ == "__main__":
    # config: d_model=32, n_head=4, dropout ignored (inference)
    B, S, D, H = 2, 8, 32, 4
    key = jax.random.PRNGKey(0)
    kx, kp = jax.random.split(key, 2)

    x = jax.random.normal(kx, (B, S, D), jnp.float32)
    params = _make_params(kp, D)

    # mask: 1 = attend, 0 = masked; hide the last key position for batch 1
    mask = jnp.ones((B, S, S), jnp.float32)
    mask = mask.at[1, :, -1].set(0.0)

    out_exp, attn_exp = _reference(x, mask, params, H)

    # f32 MXU path + f32 attn output (tight check; only approx-reciprocal and
    # the additive mask bias differ from the reference).
    out32, attn32 = self_attention_block(x, mask, params, H,
                                         mxu_dtype=jnp.float32,
                                         attn_dtype=jnp.float32)
    out32, attn32 = jax.block_until_ready((out32, attn32))
    assert jnp.allclose(out32, out_exp, atol=1e-2, rtol=1e-2)
    assert jnp.allclose(attn32, attn_exp, atol=1e-2, rtol=1e-2)

    # default path: bf16 MXU inputs + bf16 attention writeback
    out16, attn16 = self_attention_block(x, mask, params, H)
    out16, attn16 = jax.block_until_ready((out16, attn16))
    assert jnp.allclose(out16, out_exp, atol=5e-2, rtol=5e-2)
    assert jnp.allclose(attn16.astype(jnp.float32), attn_exp, atol=5e-2, rtol=5e-2)

    # attn-free path: skips the dominant (B*H*S^2) HBM writeback entirely
    out_only = self_attention_block(x, mask, params, H, return_attn=False)
    out_only = jax.block_until_ready(out_only)
    assert jnp.allclose(out_only, out_exp, atol=5e-2, rtol=5e-2)

    print("KERNEL_OK")
</pallas_src>

<mosaic_0001>
module attributes {stable_mosaic.version = 11 : i64} {
  func.func @_sab_kernel(%arg0: i32, %arg1: memref<1x8x32xf32, #tpu.memory_space<vmem>>, %arg2: memref<1x8x8xbf16, #tpu.memory_space<vmem>>, %arg3: memref<1x32xf32, #tpu.memory_space<vmem>>, %arg4: memref<1x32xf32, #tpu.memory_space<vmem>>, %arg5: memref<32x96xf32, #tpu.memory_space<vmem>>, %arg6: memref<1x96xf32, #tpu.memory_space<vmem>>, %arg7: memref<32x32xf32, #tpu.memory_space<vmem>>, %arg8: memref<1x32xf32, #tpu.memory_space<vmem>>, %arg9: memref<1x8x32xf32, #tpu.memory_space<vmem>>, %arg10: memref<1x4x8x8xf32, #tpu.memory_space<vmem>>) attributes {dimension_semantics = [#tpu.dimension_semantics<parallel>], iteration_bounds = array<i64: 2>, scalar_prefetch = 0 : i64, scratch_operands = 0 : i64, tpu.core_type = #tpu.core_type<tc>, window_params = [{transform_indices = @transform_0, window_bounds = array<i64: 1, 8, 32>}, {transform_indices = @transform_1, window_bounds = array<i64: 1, 8, 8>}, {pipeline_mode = #tpu.pipeline_mode<synchronous>, transform_indices = @transform_2, window_bounds = array<i64: 1, 32>}, {pipeline_mode = #tpu.pipeline_mode<synchronous>, transform_indices = @transform_3, window_bounds = array<i64: 1, 32>}, {pipeline_mode = #tpu.pipeline_mode<synchronous>, transform_indices = @transform_4, window_bounds = array<i64: 32, 96>}, {pipeline_mode = #tpu.pipeline_mode<synchronous>, transform_indices = @transform_5, window_bounds = array<i64: 1, 96>}, {pipeline_mode = #tpu.pipeline_mode<synchronous>, transform_indices = @transform_6, window_bounds = array<i64: 32, 32>}, {pipeline_mode = #tpu.pipeline_mode<synchronous>, transform_indices = @transform_7, window_bounds = array<i64: 1, 32>}, {transform_indices = @transform_8, window_bounds = array<i64: 1, 8, 32>}, {transform_indices = @transform_9, window_bounds = array<i64: 1, 4, 8, 8>}]} {
    %c0 = arith.constant 0 : index
    %c0_0 = arith.constant 0 : index
    %c0_1 = arith.constant 0 : index
    %0 = vector.load %arg1[%c0, %c0_0, %c0_1] : memref<1x8x32xf32, #tpu.memory_space<vmem>>, vector<1x8x32xf32>
    %1 = vector.shape_cast %0 : vector<1x8x32xf32> to vector<8x32xf32>
    %cst = arith.constant dense<0.000000e+00> : vector<8xf32>
    %2 = vector.multi_reduction <add>, %1, %cst [1] : vector<8x32xf32> to vector<8xf32>
    %3 = vector.shape_cast %2 : vector<8xf32> to vector<8x1xf32>
    %cst_2 = arith.constant 3.200000e+01 : f32
    %4 = vector.broadcast %cst_2 : f32 to vector<8x1xf32>
    %5 = arith.divf %3, %4 : vector<8x1xf32>
    %6 = vector.broadcast %5 : vector<8x1xf32> to vector<8x32xf32>
    %7 = arith.subf %1, %6 : vector<8x32xf32>
    %8 = arith.mulf %7, %7 : vector<8x32xf32>
    %cst_3 = arith.constant dense<0.000000e+00> : vector<8xf32>
    %9 = vector.multi_reduction <add>, %8, %cst_3 [1] : vector<8x32xf32> to vector<8xf32>
    %10 = vector.shape_cast %9 : vector<8xf32> to vector<8x1xf32>
    %cst_4 = arith.constant 3.200000e+01 : f32
    %11 = vector.broadcast %cst_4 : f32 to vector<8x1xf32>
    %12 = arith.divf %10, %11 : vector<8x1xf32>
    %cst_5 = arith.constant 9.99999974E-6 : f32
    %13 = vector.broadcast %cst_5 : f32 to vector<8x1xf32>
    %14 = arith.addf %12, %13 : vector<8x1xf32>
    %15 = math.rsqrt %14 : vector<8x1xf32>
    %16 = vector.broadcast %15 : vector<8x1xf32> to vector<8x32xf32>
    %17 = arith.mulf %7, %16 : vector<8x32xf32>
    %c0_6 = arith.constant 0 : index
    %c0_7 = arith.constant 0 : index
    %18 = vector.load %arg3[%c0_6, %c0_7] : memref<1x32xf32, #tpu.memory_space<vmem>>, vector<1x32xf32>
    %19 = vector.broadcast %18 : vector<1x32xf32> to vector<8x32xf32>
    %20 = arith.mulf %17, %19 : vector<8x32xf32>
    %c0_8 = arith.constant 0 : index
    %c0_9 = arith.constant 0 : index
    %21 = vector.load %arg4[%c0_8, %c0_9] : memref<1x32xf32, #tpu.memory_space<vmem>>, vector<1x32xf32>
    %22 = vector.broadcast %21 : vector<1x32xf32> to vector<8x32xf32>
    %23 = arith.addf %20, %22 : vector<8x32xf32>
    %c0_10 = arith.constant 0 : index
    %c0_11 = arith.constant 0 : index
    %24 = vector.load %arg5[%c0_10, %c0_11] : memref<32x96xf32, #tpu.memory_space<vmem>>, vector<32x96xf32>
    %cst_12 = arith.constant dense<0.000000e+00> : vector<8x96xf32>
    %25 = tpu.matmul %23, %24, %cst_12 {dimension_numbers = #tpu.dot_dimension_numbers<[1], [0], [0], [1], [0, 0, 1, 1], [], []>} : vector<8x32xf32>, vector<32x96xf32>, vector<8x96xf32> -> vector<8x96xf32>
    %c0_13 = arith.constant 0 : index
    %c0_14 = arith.constant 0 : index
    %26 = vector.load %arg6[%c0_13, %c0_14] : memref<1x96xf32, #tpu.memory_space<vmem>>, vector<1x96xf32>
    %27 = vector.broadcast %26 : vector<1x96xf32> to vector<8x96xf32>
    %28 = arith.addf %25, %27 : vector<8x96xf32>
    %29 = vector.extract_strided_slice %28 {offsets = [0, 0], sizes = [8, 32], strides = [1, 1]} : vector<8x96xf32> to vector<8x32xf32>
    %cst_15 = arith.constant 0.353553385 : f32
    %30 = vector.broadcast %cst_15 : f32 to vector<8x32xf32>
    %31 = arith.mulf %29, %30 : vector<8x32xf32>
    %32 = vector.shape_cast %31 : vector<8x32xf32> to vector<1x8x4x8xf32>
    %33 = tpu.transpose %32, [0, 2, 1, 3] : vector<1x8x4x8xf32> -> vector<1x4x8x8xf32>
    %34 = vector.shape_cast %33 : vector<1x4x8x8xf32> to vector<4x8x8xf32>
    %35 = vector.extract_strided_slice %28 {offsets = [0, 32], sizes = [8, 32], strides = [1, 1]} : vector<8x96xf32> to vector<8x32xf32>
    %36 = vector.shape_cast %35 : vector<8x32xf32> to vector<1x8x4x8xf32>
    %37 = tpu.transpose %36, [0, 2, 1, 3] : vector<1x8x4x8xf32> -> vector<1x4x8x8xf32>
    %38 = vector.shape_cast %37 : vector<1x4x8x8xf32> to vector<4x8x8xf32>
    %39 = vector.extract_strided_slice %28 {offsets = [0, 64], sizes = [8, 32], strides = [1, 1]} : vector<8x96xf32> to vector<8x32xf32>
    %40 = vector.shape_cast %39 : vector<8x32xf32> to vector<1x8x4x8xf32>
    %41 = tpu.transpose %40, [0, 2, 1, 3] : vector<1x8x4x8xf32> -> vector<1x4x8x8xf32>
    %42 = vector.shape_cast %41 : vector<1x4x8x8xf32> to vector<4x8x8xf32>
    "tpu.trace_start"() <{level = 10 : i32, message = "bqd,bkd->bqk"}> : () -> ()
    %cst_16 = arith.constant dense<0.000000e+00> : vector<4x8x8xf32>
    %43 = tpu.matmul %34, %38, %cst_16 {dimension_numbers = #tpu.dot_dimension_numbers<[2], [2], [1], [1], [0, 0, 0, 1, 1, 1], [0], [0]>} : vector<4x8x8xf32>, vector<4x8x8xf32>, vector<4x8x8xf32> -> vector<4x8x8xf32>
    "tpu.trace_stop"() : () -> ()
    %44 = vector.shape_cast %43 : vector<4x8x8xf32> to vector<1x4x8x8xf32>
    %c0_17 = arith.constant 0 : index
    %c0_18 = arith.constant 0 : index
    %c0_19 = arith.constant 0 : index
    %45 = vector.load %arg2[%c0_17, %c0_18, %c0_19] : memref<1x8x8xbf16, #tpu.memory_space<vmem>>, vector<1x8x8xbf16>
    %46 = arith.extf %45 : vector<1x8x8xbf16> to vector<1x8x8xf32>
    %47 = vector.shape_cast %46 : vector<1x8x8xf32> to vector<1x1x8x8xf32>
    %48 = vector.broadcast %47 : vector<1x1x8x8xf32> to vector<1x4x8x8xf32>
    %49 = arith.addf %44, %48 : vector<1x4x8x8xf32>
    %cst_20 = arith.constant dense<0xFF800000> : vector<1x4x8xf32>
    %50 = vector.multi_reduction <maximumf>, %49, %cst_20 [3] : vector<1x4x8x8xf32> to vector<1x4x8xf32>
    %51 = vector.shape_cast %50 : vector<1x4x8xf32> to vector<1x4x8x1xf32>
    %52 = vector.broadcast %51 : vector<1x4x8x1xf32> to vector<1x4x8x8xf32>
    %53 = arith.subf %49, %52 : vector<1x4x8x8xf32>
    %54 = math.exp %53 : vector<1x4x8x8xf32>
    %cst_21 = arith.constant dense<0.000000e+00> : vector<1x4x8xf32>
    %55 = vector.multi_reduction <add>, %54, %cst_21 [3] : vector<1x4x8x8xf32> to vector<1x4x8xf32>
    %56 = vector.shape_cast %55 : vector<1x4x8xf32> to vector<1x4x8x1xf32>
    %57 = tpu.reciprocal %56 {approx = true} : vector<1x4x8x1xf32> -> vector<1x4x8x1xf32>
    %58 = vector.broadcast %57 : vector<1x4x8x1xf32> to vector<1x4x8x8xf32>
    %59 = arith.mulf %54, %58 : vector<1x4x8x8xf32>
    %c0_22 = arith.constant 0 : index
    %c0_23 = arith.constant 0 : index
    %c0_24 = arith.constant 0 : index
    %c0_25 = arith.constant 0 : index
    %60 = vector.load %arg10[%c0_22, %c0_23, %c0_24, %c0_25] : memref<1x4x8x8xf32, #tpu.memory_space<vmem>>, vector<1x4x8x8xf32>
    tpu.vector_store %arg10[%c0_22, %c0_23, %c0_24, %c0_25], %59 {strides = array<i32>} : memref<1x4x8x8xf32, #tpu.memory_space<vmem>>, vector<1x4x8x8xf32>,
    %61 = vector.shape_cast %59 : vector<1x4x8x8xf32> to vector<4x8x8xf32>
    "tpu.trace_start"() <{level = 10 : i32, message = "bqk,bkd->bqd"}> : () -> ()
    %cst_26 = arith.constant dense<0.000000e+00> : vector<4x8x8xf32>
    %62 = tpu.matmul %61, %42, %cst_26 {dimension_numbers = #tpu.dot_dimension_numbers<[2], [1], [1], [2], [0, 0, 0, 1, 1, 2], [0], [0]>} : vector<4x8x8xf32>, vector<4x8x8xf32>, vector<4x8x8xf32> -> vector<4x8x8xf32>
    "tpu.trace_stop"() : () -> ()
    %63 = vector.shape_cast %62 : vector<4x8x8xf32> to vector<1x4x8x8xf32>
    %64 = tpu.transpose %63, [0, 2, 1, 3] : vector<1x4x8x8xf32> -> vector<1x8x4x8xf32>
    %65 = vector.shape_cast %64 : vector<1x8x4x8xf32> to vector<8x32xf32>
    %c0_27 = arith.constant 0 : index
    %c0_28 = arith.constant 0 : index
    %66 = vector.load %arg7[%c0_27, %c0_28] : memref<32x32xf32, #tpu.memory_space<vmem>>, vector<32x32xf32>
    %cst_29 = arith.constant dense<0.000000e+00> : vector<8x32xf32>
    %67 = tpu.matmul %65, %66, %cst_29 {dimension_numbers = #tpu.dot_dimension_numbers<[1], [0], [0], [1], [0, 0, 1, 1], [], []>} : vector<8x32xf32>, vector<32x32xf32>, vector<8x32xf32> -> vector<8x32xf32>
    %c0_30 = arith.constant 0 : index
    %c0_31 = arith.constant 0 : index
    %68 = vector.load %arg8[%c0_30, %c0_31] : memref<1x32xf32, #tpu.memory_space<vmem>>, vector<1x32xf32>
    %69 = vector.broadcast %68 : vector<1x32xf32> to vector<8x32xf32>
    %70 = arith.addf %67, %69 : vector<8x32xf32>
    %71 = vector.shape_cast %70 : vector<8x32xf32> to vector<1x8x32xf32>
    %c0_32 = arith.constant 0 : index
    %c0_33 = arith.constant 0 : index
    %c0_34 = arith.constant 0 : index
    %72 = vector.load %arg1[%c0_32, %c0_33, %c0_34] : memref<1x8x32xf32, #tpu.memory_space<vmem>>, vector<1x8x32xf32>
    %73 = arith.addf %71, %72 : vector<1x8x32xf32>
    %c0_35 = arith.constant 0 : index
    %c0_36 = arith.constant 0 : index
    %c0_37 = arith.constant 0 : index
    %74 = vector.load %arg9[%c0_35, %c0_36, %c0_37] : memref<1x8x32xf32, #tpu.memory_space<vmem>>, vector<1x8x32xf32>
    tpu.vector_store %arg9[%c0_35, %c0_36, %c0_37], %73 {strides = array<i32>} : memref<1x8x32xf32, #tpu.memory_space<vmem>>, vector<1x8x32xf32>,
    return
  }
  func.func @transform_0(%arg0: i32) -> (i32, i32, i32) {
    %c0_i32 = arith.constant 0 : i32
    %c0_i32_0 = arith.constant 0 : i32
    %c0_i32_1 = arith.constant 0 : i32
    return %arg0, %c0_i32, %c0_i32_0 : i32, i32, i32
  }
  func.func @transform_1(%arg0: i32) -> (i32, i32, i32) {
    %c0_i32 = arith.constant 0 : i32
    %c0_i32_0 = arith.constant 0 : i32
    %c0_i32_1 = arith.constant 0 : i32
    return %arg0, %c0_i32, %c0_i32_0 : i32, i32, i32
  }
  func.func @transform_2(%arg0: i32) -> (i32, i32) {
    %c0_i32 = arith.constant 0 : i32
    %c0_i32_0 = arith.constant 0 : i32
    %c0_i32_1 = arith.constant 0 : i32
    return %c0_i32, %c0_i32_0 : i32, i32
  }
  func.func @transform_3(%arg0: i32) -> (i32, i32) {
    %c0_i32 = arith.constant 0 : i32
    %c0_i32_0 = arith.constant 0 : i32
    %c0_i32_1 = arith.constant 0 : i32
    return %c0_i32, %c0_i32_0 : i32, i32
  }
  func.func @transform_4(%arg0: i32) -> (i32, i32) {
    %c0_i32 = arith.constant 0 : i32
    %c0_i32_0 = arith.constant 0 : i32
    %c0_i32_1 = arith.constant 0 : i32
    return %c0_i32, %c0_i32_0 : i32, i32
  }
  func.func @transform_5(%arg0: i32) -> (i32, i32) {
    %c0_i32 = arith.constant 0 : i32
    %c0_i32_0 = arith.constant 0 : i32
    %c0_i32_1 = arith.constant 0 : i32
    return %c0_i32, %c0_i32_0 : i32, i32
  }
  func.func @transform_6(%arg0: i32) -> (i32, i32) {
    %c0_i32 = arith.constant 0 : i32
    %c0_i32_0 = arith.constant 0 : i32
    %c0_i32_1 = arith.constant 0 : i32
    return %c0_i32, %c0_i32_0 : i32, i32
  }
  func.func @transform_7(%arg0: i32) -> (i32, i32) {
    %c0_i32 = arith.constant 0 : i32
    %c0_i32_0 = arith.constant 0 : i32
    %c0_i32_1 = arith.constant 0 : i32
    return %c0_i32, %c0_i32_0 : i32, i32
  }
  func.func @transform_8(%arg0: i32) -> (i32, i32, i32) {
    %c0_i32 = arith.constant 0 : i32
    %c0_i32_0 = arith.constant 0 : i32
    %c0_i32_1 = arith.constant 0 : i32
    return %arg0, %c0_i32, %c0_i32_0 : i32, i32, i32
  }
  func.func @transform_9(%arg0: i32) -> (i32, i32, i32, i32) {
    %c0_i32 = arith.constant 0 : i32
    %c0_i32_0 = arith.constant 0 : i32
    %c0_i32_1 = arith.constant 0 : i32
    %c0_i32_2 = arith.constant 0 : i32
    return %arg0, %c0_i32, %c0_i32_0, %c0_i32_1 : i32, i32, i32, i32
  }
}

</mosaic_0001>

<bundles_post_ra>
// kernel: tpu_custom_call.1
= control target key start
LH: loop header
LB: loop body
LE: loop exit
PB: predicated region body
PF: predicated region fallthrough
CT: control target
= control target key end

     0   :  { %s2392_s0 = inlined_call_operand.hbm [shape: f32[2,8,32], index: 0, kind: input, shape index: {}]   ;;  %s2393_s1 = inlined_call_operand.hbm [shape: bf16[2,8,8], index: 1, kind: input, shape index: {}]   ;;  %s2394_s2 = inlined_call_operand.vmem [shape: f32[1,32], index: 2, kind: input, shape index: {}]   ;;  %s2395_s3 = inlined_call_operand.vmem [shape: f32[1,32], index: 3, kind: input, shape index: {}]   ;;  %s2396_s4 = inlined_call_operand.hbm [shape: f32[32,96], index: 4, kind: input, shape index: {}]   ;;  %s2397_s5 = inlined_call_operand.vmem [shape: f32[1,96], index: 5, kind: input, shape index: {}]   ;;  %s2398_s6 = inlined_call_operand.hbm [shape: f32[32,32], index: 6, kind: input, shape index: {}]   ;;  %s2399_s7 = inlined_call_operand.vmem [shape: f32[1,32], index: 7, kind: input, shape index: {}]   ;;  %s2400_s8 = inlined_call_operand.hbm [shape: f32[2,8,32], index: 8, kind: output, shape index: {0}]   ;;  %s2401_s9 = inlined_call_operand.hbm [shape: f32[2,4,8,8], index: 9, kind: output, shape index: {1}]  }
   0x1   :  { %2408 = sst [smem:[#allocation24_spill]] %s2396_s4 }
   0x2   :  { %2409 = sst [smem:[#allocation25_spill]] %s2398_s6 }
   0x3   :  { %2410 = sst [smem:[#allocation26_spill]] %s2400_s8 }
   0x4   :  { %15 = vsyncpa [#allocation3], 0 }
   0x5   :  { %17 = vsyncpa [#allocation3 + $0x1], 0 }
   0x6   :  { %18 = vsyncpa [#allocation6], 0 }
   0x7   :  { %20 = vsyncpa [#allocation6 + $0x1], 0 }
   0x8   :  { %21 = vsyncpa [#allocation9], 0 }
   0x9   :  { %22 = vsyncpa [#allocation4], 0 }
   0xa   :  { %24 = vsyncpa [#allocation4 + $0x1], 0 }
   0xb   :  { %25 = vsyncpa [#allocation12], 0 }
   0xc   :  { %27 = vsyncpa [#allocation12 + $0x1], 0  ;;  %s1934_s30 = smov 0   ;;  %s1936_s10 = smov 0  }
   0xd   :  { %s1938_s11 = smov 0   ;;  %s1940_s12 = smov 0  }
   0xe LB: > { %2411 = sst [smem:[#allocation19_spill]] %s1854_s30  ;;  %s1958_s16 = sadd.s32 4294967295, %s1866_s12   ;;  %s1866_s12 = sphi %s1940_s12, %s2428_s12   ;;  %s1862_s11 = sphi %s1938_s11, %s2430_s11   ;;  %s1858_s10 = sphi %s1936_s10, %s2432_s10   ;;  %s1854_s30 = sphi %s1934_s30, %s2431_s30  }
   0xf   : > { %2412 = sst [smem:[#allocation20_spill]] %s1862_s11  ;;  %p1474_p0 = scmp.ge.s32.totalorder %s1866_s12, 1 }
  0x10   : > { %s2413_s4 = sld [smem:[#allocation24_spill]]  ;;  %p54_p1 = scmp.eq.s32.totalorder %s1958_s16, 0 }
  0x11   : > { %p268_p2 = scmp.lt.s32.totalorder %s1866_s12, 3  ;;  %s1868_s18 = smov [#allocation7]  }
  0x12   : > { %s287_s19 = sshll.u32 %s1868_s18, 4  ;;  %s2415_s6 = sld [smem:[#allocation25_spill]]  ;;  %s288_s19 = int_to_ptr.vmem [resolvable:$true] %s287_s19 }
  0x13   : > { %p1963_p3 = pnand %p1474_p0, %p268_p2  ;;  %s1869_s23 = smov [#allocation8]  }
  0x14   : > { %s304_s24 = sshll.u32 %s1869_s23, 4  ;;  %s1870_s25 = smov 128   ;;  %s305_s24 = int_to_ptr.vmem [resolvable:$true] %s304_s24 }
  0x15   : > { %p1527_p4 = pneg %p1963_p3  ;;  %s1871_s26 = smov 8  }
  0x16   : > { %s285_s15 = sshll.u32 %s2413_s4, 4  ;;  %s1473_s27 = sadd.s32 4294967294, %s1866_s12   ;;  %s286_s15 = int_to_ptr.hbm [resolvable:$true] %s285_s15 }
  0x17   : > { %p1528_p6 = pnand %p1527_p4, %p54_p1  ;;  %s1977_s28 = sadd.s32 1, %s1866_s12  }
  0x18   : > { %s302_s22 = sshll.u32 %s2415_s6, 4  ;;  %2416 = sst [smem:[#allocation21_spill]] %s1977_s28  ;;  %s303_s22 = int_to_ptr.hbm [resolvable:$true] %s302_s22 }
  0x19   : > { %1530 = dma.hbm_to_vmem [thread:$0]  (!%p1528_p6), %s286_s15, 512, %s288_s19, [#allocation6], %s1870_s25, %s1870_s25, %s1871_s26  }
  0x1a   : > { %1533 = dma.hbm_to_vmem [thread:$0]  (!%p1528_p6), %s303_s22, 512, %s305_s24, [#allocation9], %s1870_s25, %s1870_s25, %s1871_s26  }
  0x1b   : > { %s37_s29 = ssub.s32 %s1866_s12, %s1977_s28  ;;  %s40_s13 = sadd.s32 1, %s1862_s11 }
  0x1c   : > { %p38_p7 = scmp.eq.s32.totalorder %s37_s29, 0  ;;  %p47_p8 = scmp.ne.s32.totalorder %s1862_s11, %s1858_s10 }
  0x1d   : > { %p48_p9 = scmp.eq.s32.totalorder %s1866_s12, 0  ;;  %p53_p10 = scmp.ne.s32.totalorder %s1858_s10, %s1854_s30 }
  0x1e   : > { %s1988_s14 = scalar_select %p38_p7, %s1862_s11, %s40_s13  }
  0x1f   : > { %p1990_p11 = por %p48_p9, %p47_p8  ;;  %p1996_p12 = por %p54_p1, %p53_p10 }
  0x20   : > { %2417 = sst [smem:[#allocation22_spill]] %s1988_s14  ;;  %p229_p13 = scmp.eq.s32.totalorder %s1958_s16, 1 }
  0x21   : > { %p235_p0 = scmp.eq.s32.totalorder %s1473_s27, 1  ;;  %p1550_p2 = scmp.lt.s32.totalorder %s1866_s12, 2 }
  0x22   : > { %s2003_s19 = sand.u32 1, %s1862_s11   ;;  %p2005_p4 = por %p229_p13, %p47_p8 }
  0x23   : > { %p2009_p6 = por %p235_p0, %p53_p10  ;;  %s1478_s22 = sshll.u32 %s2003_s19, 3 }
  0x24   : > { %s1479_s23 = sshll.u32 %s1866_s12, 3  ;;  %s325_s27 = scalar_lea.vmem [#allocation2], %s1478_s22 }
  0x25   : > { %s2421_s21 = scalar_select %p2009_p6, 1, 0 }
  0x26   : > { %s329_s26 = scalar_lea.hbm %s2392_s0, %s1479_s23  ;;  %s333_s29 = sshll.u32 %s325_s27, 4  ;;  %s334_s29 = int_to_ptr.vmem [resolvable:$true] %s333_s29 }
  0x27   : > { %2422 = sst [smem:[#allocation23_spill]] %s2421_s21  ;;  %s331_s13 = sshll.u32 %s329_s26, 4  ;;  %s332_s13 = int_to_ptr.hbm [resolvable:$true] %s331_s13 }
  0x28   : > { %p2020_p7 = pnand %p1550_p2, %p1990_p11  ;;  %s340_s6 = sand.u32 1, %s1866_s12  }
  0x29   : > { %s1480_s14 = sshll.u32 %s2003_s19, 2  ;;  %s322_s11 = scalar_lea.sflag [#allocation3], %s2003_s19 }
  0x2a   : > { %s1696_s28 = sshra.s32 %s332_s13, 4  ;;  %p1700_p9 = pneg %p2020_p7  ;;  %s1697_s28 = int_to_ptr.hbm [resolvable:$true] %s1696_s28 }
  0x2b   : > { %s1698_s21 = scalar_lea.hbm %s1697_s28, 8  ;;  %s1703_s23 = scalar_lea.hbm %s2392_s0, 16 }
  0x2c   : > { %p1699_p8 = scmp.ne.s32.totalorder %s1697_s28, %s1698_s21  ;;  %p1704_p11 = scmp.lt.s32.totalorder %s1697_s28, %s2392_s0 }
  0x2d   : > { %p1705_p0 = scmp.lt.s32.totalorder %s1703_s23, %s1698_s21 }
  0x2e   : > { %p1701_p10 = pnand %p1700_p9, %p1699_p8 }
  0x2f   : > { %p1706_p2 = por %p1705_p0, %p1704_p11 }
  0x30   : > { %p1702_p13 = pneg %p1701_p10 }
  0x32   : > { %p1707_p5 = pnand %p1706_p2, %p1702_p13 }
  0x34   : > { %1710 = shalt.err (!%p1707_p5)
}
  0x35   : > { %1537 = dma.hbm_to_vmem [thread:$0]  (!%p2020_p7), %s332_s13, 128, %s334_s29, %s322_s11  }
  0x36   : > { %s1481_s19 = sshll.u32 %s1866_s12, 2  ;;  %s344_s18 = scalar_lea.vmem [#allocation5], %s1480_s14 }
  0x37   : > { %s348_s30 = scalar_lea.hbm %s2393_s1, %s1481_s19  ;;  %s352_s22 = sshll.u32 %s344_s18, 4  ;;  %s353_s22 = int_to_ptr.vmem [resolvable:$true] %s352_s22 }
  0x38   : > { %s350_s8 = sshll.u32 %s348_s30, 4  ;;  %s341_s28 = scalar_lea.sflag [#allocation6], %s340_s6  ;;  %s351_s8 = int_to_ptr.hbm [resolvable:$true] %s350_s8 }
  0x39   : > { %s1726_s21 = sshra.s32 %s351_s8, 4  ;;  %s1733_s13 = scalar_lea.hbm %s2393_s1, 8  ;;  %s1727_s21 = int_to_ptr.hbm [resolvable:$true] %s1726_s21 }
  0x3a   : > { %s1728_s23 = scalar_lea.hbm %s1727_s21, 4  ;;  %p1734_p13 = scmp.lt.s32.totalorder %s1727_s21, %s2393_s1 }
  0x3b   : > { %p1729_p5 = scmp.ne.s32.totalorder %s1727_s21, %s1728_s23  ;;  %p1735_p11 = scmp.lt.s32.totalorder %s1733_s13, %s1728_s23 }
  0x3d   : > { %p1731_p8 = pnand %p1729_p5, %p1700_p9  ;;  %p1736_p0 = por %p1735_p11, %p1734_p13 }
  0x3f   : > { %p1732_p10 = pneg %p1731_p8 }
  0x41   : > { %p1737_p2 = pnand %p1736_p0, %p1732_p10 }
  0x43   : > { %1740 = shalt.err (!%p1737_p2)
}
  0x44   : > { %1540 = dma.hbm_to_vmem [thread:$0]  (!%p2020_p7), %s351_s8, 64, %s353_s22, %s341_s28  }
  0x45   : > { %361 = sbr.rel (%p1963_p3) target bundleno = 1561 (0x619), region = 52  ;;  %s2058_s6 = sand.u32 (!%p1963_p3), 1, %s1858_s10  }
  0x46   : > { %s1483_s30 = sshll.u32 (!%p1963_p3), %s2058_s6, 3  ;;  %s364_s14 = scalar_lea.sflag (!%p1963_p3), [#allocation3], %s2058_s6 }
  0x47   : > { %s367_s19 = scalar_lea.vmem (!%p1963_p3), [#allocation2], %s1483_s30 }
  0x4a   : > { %1829 = dma.done.wait (%p1996_p12), %s364_s14, 128  }
  0x4b   : > { %1831 = vsyncadd (%p1996_p12), %s364_s14, 4294967168  ;;  %s373_s4 = sand.u32 1, %s1958_s16   ;;  %s1484_s8 = sshll.u32 %s2058_s6, 2 }
  0x4c   : > { %s374_s17 = scalar_lea.sflag [#allocation6], %s373_s4  ;;  %s2070_s26 = scalar_lea.vmem [#allocation5], %s1484_s8 }
  0x4d   : > { %1833 = dma.done.wait (%p1996_p12), %s374_s17, 64  }
  0x4e   : > { %1835 = vsyncadd (%p1996_p12), %s374_s17, 4294967232 }
  0x4f   : > { %1837 = dma.done.wait (%p54_p1), [#allocation6], 512  }
  0x50   : > { %1839 = vsyncadd (%p54_p1), [#allocation6], 4294966784 }
  0x51   : > { %1841 = dma.done.wait (%p54_p1), [#allocation9], 512  }
  0x52   : > { %1843 = vsyncadd (%p54_p1), [#allocation9], 4294966784  ;;  %vm434_vm0 = vcmask 261120   ;;  %v2084_v0 = vld [vmem:[%s367_s19] sm:$0xff]  ;;  %v1872_v2 = vmov 32.0   ;;  %v477_v14 = vld [vmem:[#allocation7 + $0x18] sm:$0xff] }
  0x53   : > { %v435_v1 = vsel %vm434_vm0, %v2084_v0, 0.0  ;;  %1616 = vrcp.f32 %v1872_v2  ;;  %497 = vmatpush.msra.mxu0 %v477_v14  ;;  %v476_v15 = vld [vmem:[#allocation7 + $0x10] sm:$0xff]  ;;  %v475_v16 = vld [vmem:[#allocation7 + $0x8] sm:$0xff]  ;;  %v474_v17 = vld [vmem:[#allocation7] sm:$0xff]  ;;  %s1873_s23 = smov 96   ;;  %s1874_s11 = smov 120  }
  0x54   : > { %436 = vadd.xlane.f32.xlu0 %v435_v1  ;;  %v1612_v27 = vld [vmem:[%s2394_s2] ss:$0 sm:$0xff]  ;;  %s1875_s29 = smov 112   ;;  %s1876_s13 = smov 104   ;;  %v1877_v43 = vmov 1983009808  }
  0x55   : > { %498 = vmatpush.msra.mxu0 %v476_v15  ;;  %v1613_v30 = vld [vmem:[%s2395_s3] ss:$0 sm:$0xff]  ;;  %v522_v44 = vunpack.c.l.s4 %v1877_v43  ;;  %vm517_vm5 = vcmask 1047556   ;;  %v1878_v52 = vmov 1934713408   ;;  %vm878_vm6 = vcmask 64512  }
  0x56   : > { %v1614_v33 = vld [vmem:[%s2397_s5] ss:$0 sm:$0xff]  ;;  %v546_v53 = vunpack.c.l.s4 %v1878_v52  ;;  %s1879_s24 = smov 64   ;;  %s1488_s25 = sshll.u32 %s2058_s6, 5  ;;  %vm1252_vm7 = vcmask 130048   ;;  %vm1254_vm8 = vcmask 195584  }
  0x57   : > { %499 = vmatpush.msra.mxu0 %v475_v16  ;;  %v2117_v49 = vunpack.c.0.s8 %v522_v44  ;;  %s2275_s14 = scalar_lea.vmem [#allocation11], %s1488_s25  ;;  %s1880_s19 = smov 16  }
  0x58   : > { %v2124_v61 = vunpack.c.0.s8 %v546_v53  ;;  %s1881_s4 = smov 8   ;;  %s1882_s8 = smov 24  }
  0x59   : > { %v1617_v3 = vpop.eup %1616  ;;  %500 = vmatpush.msra.mxu0 %v474_v17  ;;  %s1510_s17 = sshll.u32 %s1958_s16, 5  ;;  %s1296_s28 = scalar_lea.sflag [#allocation12], %s2058_s6 }
  0x5a   : > { %v439_v4 = vmul.f32 32.0, %v1617_v3  ;;  %vm443_vm1 = vweird.f32 %v1617_v3  ;;  %s1321_s18 = scalar_lea.hbm %s2401_s9, %s1510_s17 }
  0x5b   : > { %s1324_s22 = sshll.u32 %s1321_s18, 4  ;;  %s1325_s22 = int_to_ptr.hbm [resolvable:$true] %s1324_s22 }
  0x5c   : > { %v440_v5 = vsub.f32 1.0, %v439_v4  ;;  %s1770_s21 = sshra.s32 %s1325_s22, 4  ;;  %s1771_s21 = int_to_ptr.hbm [resolvable:$true] %s1770_s21 }
  0x5d   : > { %p1777_p7 = scmp.lt.s32.totalorder %s1771_s21, %s2401_s9 }
  0x5e   : > { %v441_v6 = vmul.f32 %v1617_v3, %v440_v5 }
  0x60   : > { %v442_v7 = vadd.f32 %v1617_v3, %v441_v6 }
  0x62   : > { %v444_v8 = vsel %vm443_vm1, %v1617_v3, %v442_v7 }
  0xc7   : > { %v437_v9 = vpop.xlane.xlu0 %436 }
  0xc8   : > { %v445_v10 = vmul.f32 %v444_v8, %v437_v9 }
  0xca   : > { %v446_v11 = vsub.f32 %v2084_v0, %v445_v10 }
  0xcc   : > { %v447_v12 = vmul.f32 %v446_v11, %v446_v11 }
  0xce   : > { %v448_v13 = vsel %vm434_vm0, %v447_v12, 0.0 }
  0xcf   : > { %449 = vadd.xlane.f32.xlu0 %v448_v13 }
 0x142   : > { %v450_v18 = vpop.xlane.xlu0 %449 }
 0x143   : > { %v451_v19 = vmul.f32 %v450_v18, %v444_v8 }
 0x145   : > { %v452_v20 = vadd.f32 1e-05, %v451_v19 }
 0x147   : > { %1618 = vrsqrt.f32 %v452_v20  ;;  %vm459_vm3 = vweird.f32 %v452_v20 }
 0x14d   : > { %v1619_v21 = vpop.eup %1618 }
 0x14e   : > { %v454_v22 = vmul.f32 %v1619_v21, %v452_v20  ;;  %vm460_vm2 = vweird.f32 %v1619_v21 }
 0x14f   : > { %vm461_vm4 = vmor %vm459_vm3, %vm460_vm2 }
 0x150   : > { %v455_v23 = vmul.f32 %v1619_v21, %v454_v22 }
 0x152   : > { %v456_v24 = vmul.f32 0.5, %v455_v23 }
 0x154   : > { %v457_v25 = vsub.f32 1.5, %v456_v24 }
 0x156   : > { %v458_v26 = vmul.f32 %v1619_v21, %v457_v25 }
 0x158   : > { %v462_v28 = vsel %vm461_vm4, %v1619_v21, %v458_v26 }
 0x159   : > { %v463_v29 = vmul.f32 %v462_v28, %v446_v11 }
 0x15b   : > { %v468_v31 = vmul.f32 %v1612_v27, %v463_v29 }
 0x15d   : > { %v473_v32 = vadd.f32 %v1613_v30, %v468_v31 }
 0x15f   : > { %1489 = vmatmul.msk.f32.vlgmr.msra.gmra.mxu0 %vm434_vm0, %v473_v32 }
 0x1dc   : > { %v502_v34 = vpop.f32.mrf.mxu0 }
 0x1dd   : > { %v2100_v35 = vadd.f32 %v1614_v33, %v502_v34 }
 0x1df   : > { %634 = vrot.lane.b32.xlu0 %v2100_v35, %s1873_s23  ;;  %628 = vrot.lane.b32.xlu2 %v2100_v35, %s1874_s11  ;;  %v505_v36 = vmul.f32 0.35355338, %v2100_v35 }
 0x1e0   : > { %630 = vrot.lane.b32.xlu1 %v2100_v35, %s1875_s29 }
 0x1e1   : > { %v519_v54 = vrot.slane %v505_v36, 4 }
 0x1e7   : > { %510 = vrot.lane.b32.xlu2 %v505_v36, %s1875_s29 }
 0x1e8   : > { %632 = vrot.lane.b32.xlu1 %v2100_v35, %s1876_s13 }
 0x239   : > { %v2113_v39 = vpop.permute.xlu2 %628 }
 0x241   : > { %v511_v40 = vpop.permute.xlu2 %510 }
 0x242   : > { %v516_v50 = vrot.slane %v511_v40, 4  ;;  %v520_v58 = vsel %vm517_vm5, %v511_v40, %v519_v54 }
 0x243   : > { %v528_v4 = vperm.slane %v520_v58, %v2117_v49 }
 0x244   : > { %v518_v57 = vsel %vm517_vm5, %v516_v50, %v505_v36 }
 0x245   : > { %v524_v3 = vperm.slane %v518_v57, %v2117_v49  ;;  %v555_v19 = vrot.slane %v528_v4, 4 }
 0x247   : > { %v543_v18 = vrot.slane %v524_v3, 4 }
 0x251   : > { %v635_v45 = vpop.permute.xlu0 %634 }
 0x252   : > { %v2107_v37 = vpop.permute.xlu1 %630  ;;  %v648_v47 = vrot.slane %v635_v45, 4 }
 0x253   : > { %638 = vrot.lane.b32.xlu2 %v2107_v37, %s1873_s23 }
 0x25a   : > { %v2110_v38 = vpop.permute.xlu1 %632 }
 0x25b   : > { %640 = vrot.lane.b32.xlu1 %v2110_v38, %s1873_s23  ;;  %513 = vrot.lane.b32.xlu2 %v505_v36, %s1876_s13  ;;  %s1776_s13 = scalar_lea.hbm %s2401_s9, 64 }
 0x263   : > { %636 = vrot.lane.b32.xlu1 %v2113_v39, %s1873_s23  ;;  %s1772_s23 = scalar_lea.hbm %s1771_s21, 32 }
 0x264   : > { %p1773_p1 = scmp.ne.s32.totalorder %s1771_s21, %s1772_s23  ;;  %p1778_p9 = scmp.lt.s32.totalorder %s1776_s13, %s1772_s23 }
 0x266   : > { %p1774_p3 = pnand %p1773_p1, %p2005_p4  ;;  %p1779_p5 = por %p1778_p9, %p1777_p7 }
 0x268   : > { %p1775_p12 = pneg %p1774_p3 }
 0x26a   : > { %p1780_p8 = pnand %p1779_p5, %p1775_p12 }
 0x26b   : > { %507 = vrot.lane.b32.xlu1 %v505_v36, %s1874_s11 }
 0x2ad   : > { %v639_v41 = vpop.permute.xlu2 %638 }
 0x2ae   : > { %v646_v42 = vrot.slane %v639_v41, 4  ;;  %v649_v51 = vsel %vm517_vm5, %v639_v41, %v648_v47 }
 0x2af   : > { %v657_v59 = vperm.slane %v649_v51, %v2117_v49 }
 0x2b0   : > { %v647_v48 = vsel %vm517_vm5, %v646_v42, %v635_v45 }
 0x2b1   : > { %v653_v55 = vperm.slane %v647_v48, %v2117_v49  ;;  %v684_v6 = vrot.slane %v657_v59, 4 }
 0x2b3   : > { %v672_v1 = vrot.slane %v653_v55, 4 }
 0x2b5   : > { %v514_v10 = vpop.permute.xlu2 %513 }
 0x2b6   : > { %v529_v20 = vrot.slane %v514_v10, 4 }
 0x2cd   : > { %v641_v46 = vpop.permute.xlu1 %640 }
 0x2ce   : > { %v658_v56 = vrot.slane %v641_v46, 4 }
 0x2d5   : > { %v637_v60 = vpop.permute.xlu1 %636 }
 0x2d6   : > { %v659_v62 = vsel %vm517_vm5, %v658_v56, %v637_v60  ;;  %v660_v63 = vrot.slane %v637_v60, 4 }
 0x2d7   : > { %v665_v2 = vperm.slane %v659_v62, %v2117_v49 }
 0x2d8   : > { %v661_v5 = vsel %vm517_vm5, %v641_v46, %v660_v63 }
 0x2d9   : > { %v669_v7 = vperm.slane %v661_v5, %v2117_v49  ;;  %v670_v8 = vrot.slane %v665_v2, 4  ;;  %v673_v9 = vsel %vm517_vm5, %v665_v2, %v672_v1 }
 0x2da   : > { %v681_v11 = vperm.slane %v673_v9, %v2124_v61 }
 0x2db   : > { %v671_v12 = vsel %vm517_vm5, %v670_v8, %v653_v55  ;;  %v682_v13 = vrot.slane %v669_v7, 4  ;;  %v685_v14 = vsel %vm517_vm5, %v669_v7, %v684_v6 }
 0x2dc   : > { %v677_v15 = vperm.slane %v671_v12, %v2124_v61  ;;  %v693_v16 = vperm.slane %v685_v14, %v2124_v61  ;;  %v696_v17 = vrot.slane %v681_v11, 4 }
 0x2dd   : > { %v683_v21 = vsel %vm517_vm5, %v682_v13, %v657_v59  ;;  %v508_v22 = vpop.permute.xlu1 %507 }
 0x2de   : > { %v689_v23 = vperm.slane %v683_v21, %v2124_v61  ;;  %v694_v24 = vrot.slane %v677_v15, 4  ;;  %v697_v25 = vsel %vm517_vm5, 0.0, %v696_v17  ;;  %v700_v26 = vrot.slane %v693_v16, 4 }
 0x2df   : > { %v702_v27 = vsel %vm517_vm5, %v696_v17, %v677_v15  ;;  %v707_v28 = vrot.slane %v697_v25, 4  ;;  %v530_v29 = vsel %vm517_vm5, %v529_v20, %v508_v22  ;;  %v531_v30 = vrot.slane %v508_v22, 4 }
 0x2e0   : > { %v695_v31 = vsel %vm517_vm5, 0.0, %v694_v24  ;;  %v698_v32 = vrot.slane %v689_v23, 4  ;;  %v701_v33 = vsel %vm517_vm5, 0.0, %v700_v26  ;;  %v536_v34 = vperm.slane %v530_v29, %v2117_v49 }
 0x2e1   : > { %v718_v36 = vrot.slane %v701_v33, 4  ;;  %v532_v40 = vsel %vm517_vm5, %v514_v10, %v531_v30  ;;  %v706_v41 = vperm.slane %v702_v27, %v2117_v49  ;;  %v708_v42 = vsel %vm517_vm5, %v707_v28, %v695_v31 }
 0x2e2   : > { %v540_v43 = vperm.slane %v532_v40, %v2117_v49  ;;  %v541_v44 = vrot.slane %v536_v34, 4  ;;  %v544_v45 = vsel %vm517_vm5, %v536_v34, %v543_v18  ;;  %v699_v46 = vsel %vm517_vm5, 0.0, %v698_v32 }
 0x2e3   : > { %v552_v47 = vperm.slane %v544_v45, %v2124_v61  ;;  %v712_v48 = vperm.slane %v708_v42, %v2117_v49  ;;  %v713_v50 = vsel %vm517_vm5, %v700_v26, %v689_v23  ;;  %v719_v51 = vsel %vm517_vm5, %v718_v36, %v699_v46 }
 0x2e4   : > { %v542_v52 = vsel %vm517_vm5, %v541_v44, %v524_v3  ;;  %v553_v53 = vrot.slane %v540_v43, 4  ;;  %v556_v54 = vsel %vm517_vm5, %v540_v43, %v555_v19  ;;  %v717_v55 = vperm.slane %v713_v50, %v2117_v49 }
 0x2e5   : > { %v548_v56 = vperm.slane %v542_v52, %v2124_v61  ;;  %v564_v57 = vperm.slane %v556_v54, %v2124_v61  ;;  %v567_v58 = vrot.slane %v552_v47, 4  ;;  %v723_v59 = vperm.slane %v719_v51, %v2117_v49 }
 0x2e6   : > { %v554_v60 = vsel %vm517_vm5, %v553_v53, %v528_v4  ;;  %v724_v62 = vrot.slane %v712_v48, 4  ;;  %v726_v63 = vrot.slane %v706_v41, 4  ;;  %v738_v1 = vrot.slane %v717_v55, 4 }
 0x2e7   : > { %v560_v2 = vperm.slane %v554_v60, %v2124_v61  ;;  %v565_v3 = vrot.slane %v548_v56, 4  ;;  %v568_v5 = vsel %vm517_vm5, 0.0, %v567_v58  ;;  %v571_v6 = vrot.slane %v564_v57, 4 }
 0x2e8   : > { %v573_v7 = vsel %vm517_vm5, %v567_v58, %v548_v56  ;;  %v578_v8 = vrot.slane %v568_v5, 4  ;;  %v725_v9 = vsel %vm517_vm5, %v724_v62, %v706_v41  ;;  %v736_v10 = vrot.slane %v723_v59, 4 }
 0x2e9   : > { %v566_v11 = vsel %vm517_vm5, 0.0, %v565_v3  ;;  %v569_v12 = vrot.slane %v560_v2, 4  ;;  %v572_v4 = vsel %vm517_vm5, 0.0, %v571_v6  ;;  %v731_v13 = vperm.slane %v725_v9, %v2124_v61 }
 0x2ea   : > { %v579_v14 = vsel %vm517_vm5, %v578_v8, %v566_v11  ;;  %v589_v15 = vrot.slane %v572_v4, 4  ;;  %v737_v16 = vsel %vm517_vm5, %v736_v10, %v717_v55  ;;  %v727_v17 = vsel %vm517_vm5, %v712_v48, %v726_v63  ;;  %v983_v63 = vld [vmem:[%s2070_s26] sm:$0xf]  ;;  %s1322_s26 = sshll.u32 %s2275_s14, 4  ;;  %s1323_s26 = int_to_ptr.vmem [resolvable:$true] %s1322_s26 }
 0x2eb   : > { %v743_v18 = vperm.slane %v737_v16, %v2124_v61  ;;  %v750_v19 = vrot.slane %v731_v13, 4  ;;  %v735_v20 = vperm.slane %v727_v17, %v2124_v61  ;;  %v739_v21 = vsel %vm517_vm5, %v723_v59, %v738_v1 }
 0x2ec   : > { %v747_v22 = vperm.slane %v739_v21, %v2124_v61  ;;  %v570_v23 = vsel %vm517_vm5, 0.0, %v569_v12  ;;  %v577_v24 = vperm.slane %v573_v7, %v2117_v49  ;;  %v583_v25 = vperm.slane %v579_v14, %v2117_v49 }
 0x2ed   : > { %v751_v26 = vsel %vm517_vm5, %v743_v18, %v750_v19  ;;  %v748_v27 = vrot.slane %v743_v18, 4  ;;  %v754_v28 = vrot.slane %v735_v20, 4  ;;  %v584_v29 = vsel %vm517_vm5, %v571_v6, %v560_v2 }
 0x2ee   : > { %1492 = vmatpush.xpose.msk.msra.mxu2 %vm878_vm6, %v751_v26  ;;  %v752_v30 = vrot.slane %v747_v22, 4  ;;  %v588_v31 = vperm.slane %v584_v29, %v2117_v49  ;;  %v590_v32 = vsel %vm517_vm5, %v589_v15, %v570_v23  ;;  %v595_v33 = vrot.slane %v583_v25, 4 }
 0x2ef   : > { %v749_v34 = vsel %vm517_vm5, %v748_v27, %v731_v13  ;;  %v594_v36 = vperm.slane %v590_v32, %v2117_v49  ;;  %v597_v40 = vrot.slane %v577_v24, 4  ;;  %v755_v42 = vsel %vm517_vm5, %v747_v22, %v754_v28 }
 0x2f0   : > { %v753_v41 = vsel %vm517_vm5, %v752_v30, %v735_v20  ;;  %1490 = vmatpush.xpose.msk.msra.mxu1 %vm878_vm6, %v749_v34  ;;  %v596_v43 = vsel %vm517_vm5, %v595_v33, %v577_v24  ;;  %v609_v44 = vrot.slane %v588_v31, 4  ;;  %v984_v1 = vunpack.c.l.bf16 %v983_v63 }
 0x2f1   : > { %1494 = vmatpush.xpose.msk.msra.mxu3 %vm878_vm6, %v753_v41  ;;  %v602_v45 = vperm.slane %v596_v43, %v2124_v61  ;;  %v607_v46 = vrot.slane %v594_v36, 4  ;;  %v598_v47 = vsel %vm517_vm5, %v583_v25, %v597_v40  ;;  %v1602_v14 = vpack.i.bf16 %v2113_v39, %v2100_v35 }
 0x2f2   : > { %v610_v48 = vsel %vm517_vm5, %v594_v36, %v609_v44  ;;  %v606_v54 = vperm.slane %v598_v47, %v2124_v61  ;;  %v1607_v15 = vpack.i.bf16 %v2110_v38, %v2107_v37 }
 0x2f3   : > { %v608_v50 = vsel %vm517_vm5, %v607_v46, %v588_v31  ;;  %v621_v51 = vrot.slane %v602_v45, 4  ;;  %v618_v52 = vperm.slane %v610_v48, %v2124_v61 }
 0x2f4   : > { %1496 = vmatpush.xpose.msk.msrb.mxu1 %vm878_vm6, %v755_v42  ;;  %v614_v53 = vperm.slane %v608_v50, %v2124_v61  ;;  %v625_v60 = vrot.slane %v606_v54, 4 }
 0x2f5   : > { %v623_v55 = vrot.slane %v618_v52, 4 }
 0x2f6   : > { %v622_v56 = vsel %vm517_vm5, %v614_v53, %v621_v51  ;;  %v619_v57 = vrot.slane %v614_v53, 4  ;;  %v626_v62 = vsel %vm517_vm5, %v618_v52, %v625_v60 }
 0x2f7   : > { %1493 = vmatmul.msk.f32.vlgmr.msra.gmra.mxu2 %vm878_vm6, %v622_v56  ;;  %v624_v58 = vsel %vm517_vm5, %v623_v55, %v606_v54 }
 0x2f8   : > { %1495 = vmatmul.msk.f32.vlgmr.msra.gmra.mxu3 %vm878_vm6, %v624_v58  ;;  %v620_v59 = vsel %vm517_vm5, %v619_v57, %v602_v45 }
 0x2f9   : > { %1491 = vmatmul.msk.f32.vlgmr.msra.gmra.mxu1 %vm878_vm6, %v620_v59 }
 0x301   : > { %1497 = vmatmul.msk.f32.vlgmr.msrb.gmra.mxu1 %vm878_vm6, %v626_v62 }
 0x376   : > { %v902_v2 = vpop.f32.mrf.mxu1 }
 0x377   : > { %v985_v3 = vadd.f32 %v984_v1, %v902_v2 }
 0x379   : > { %v989_v5 = vsel %vm878_vm6, %v985_v3, -inf }
 0x37a   : > { %v928_v6 = vpop.f32.mrf.mxu2  ;;  %990 = vmax.xlane.f32.xlu2 %v989_v5 }
 0x37b   : > { %v986_v7 = vadd.f32 %v984_v1, %v928_v6  ;;  %v954_v8 = vpop.f32.mrf.mxu3 }
 0x37c   : > { %v987_v9 = vadd.f32 %v984_v1, %v954_v8 }
 0x37d   : > { %v992_v10 = vsel %vm878_vm6, %v986_v7, -inf }
 0x37e   : > { %v995_v11 = vsel %vm878_vm6, %v987_v9, -inf  ;;  %993 = vmax.xlane.f32.xlu0 %v992_v10  ;;  %v980_v12 = vpop.f32.mrf.mxu1 }
 0x37f   : > { %996 = vmax.xlane.f32.xlu1 %v995_v11  ;;  %v988_v4 = vadd.f32 %v984_v1, %v980_v12 }
 0x381   : > { %v998_v13 = vsel %vm878_vm6, %v988_v4, -inf }
 0x382   : > { %999 = vmax.xlane.f32.xlu2 %v998_v13 }
 0x392   : > { %1603 = vrot.lane.b32.xlu0 %v1602_v14, %s1879_s24 }
 0x39a   : > { %1608 = vrot.lane.b32.xlu2 %v1607_v15, %s1879_s24 }
 0x3ed   : > { %v991_v16 = vpop.xlane.xlu2 %990 }
 0x3ee   : > { %v1001_v17 = vsub.f32 %v985_v3, %v991_v16 }
 0x3f0   : > { %v1005_v18 = vmul.f32 1.442695, %v1001_v17 }
 0x3f1   : > { %v994_v19 = vpop.xlane.xlu0 %993 }
 0x3f2   : > { %1620 = vpow2.f32 %v1005_v18  ;;  %v997_v20 = vpop.xlane.xlu1 %996  ;;  %v1002_v21 = vsub.f32 %v986_v7, %v994_v19 }
 0x3f3   : > { %v1003_v22 = vsub.f32 %v987_v9, %v997_v20 }
 0x3f4   : > { %v1007_v23 = vmul.f32 1.442695, %v1002_v21 }
 0x3f5   : > { %v1009_v24 = vmul.f32 1.442695, %v1003_v22  ;;  %v1000_v25 = vpop.xlane.xlu2 %999 }
 0x3f6   : > { %v1004_v35 = vsub.f32 %v988_v4, %v1000_v25 }
 0x3f7   : > { %1622 = vpow2.f32 %v1009_v24 }
 0x3f8   : > { %v2217_v26 = vpop.eup %1620  ;;  %1624 = vpow2.f32 %v1007_v23  ;;  %v1011_v38 = vmul.f32 1.442695, %v1004_v35 }
 0x3f9   : > { %v1013_v37 = vsel %vm878_vm6, %v2217_v26, 0.0 }
 0x3fa   : > { %1014 = vadd.xlane.f32.xlu1 %v1013_v37  ;;  %1626 = vpow2.f32 %v1011_v38 }
 0x3fd   : > { %v2221_v39 = vpop.eup %1622  ;;  %v1609_v28 = vpop.permute.xlu2 %1608 }
 0x3fe   : > { %v2223_v27 = vpop.eup %1624  ;;  %v1019_v29 = vsel %vm878_vm6, %v2221_v39, 0.0  ;;  %v1611_v30 = vunpack.i.h.bf16 %v1609_v28  ;;  %v1610_v31 = vunpack.i.l.bf16 %v1609_v28 }
 0x3ff   : > { %1020 = vadd.xlane.f32.xlu0 %v1019_v29  ;;  %v1016_v32 = vsel %vm878_vm6, %v2223_v27, 0.0 }
 0x400   : > { %v780_v34 = vrot.slane %v1611_v30, 4  ;;  %v768_v36 = vrot.slane %v1610_v31, 4  ;;  %v2229_v42 = vpop.eup %1626 }
 0x401   : > { %v1022_v52 = vsel %vm878_vm6, %v2229_v42, 0.0 }
 0x402   : > { %1017 = vadd.xlane.f32.xlu1 %v1016_v32 }
 0x404   : > { %v1604_v33 = vpop.permute.xlu0 %1603 }
 0x405   : > { %v1606_v40 = vunpack.i.h.bf16 %v1604_v33  ;;  %v1605_v41 = vunpack.i.l.bf16 %v1604_v33 }
 0x407   : > { %v782_v43 = vrot.slane %v1606_v40, 4  ;;  %v769_v44 = vsel %vm517_vm5, %v768_v36, %v1605_v41  ;;  %v770_v45 = vrot.slane %v1605_v41, 4  ;;  %v781_v46 = vsel %vm517_vm5, %v780_v34, %v1606_v40 }
 0x408   : > { %v775_v47 = vperm.slane %v769_v44, %v2117_v49  ;;  %v787_v48 = vperm.slane %v781_v46, %v2117_v49 }
 0x409   : > { %v771_v50 = vsel %vm517_vm5, %v1610_v31, %v770_v45  ;;  %v783_v51 = vsel %vm517_vm5, %v1611_v30, %v782_v43 }
 0x40a   : > { %v779_v53 = vperm.slane %v771_v50, %v2117_v49  ;;  %v791_v54 = vperm.slane %v783_v51, %v2117_v49  ;;  %v792_v55 = vrot.slane %v787_v48, 4  ;;  %v794_v56 = vrot.slane %v775_v47, 4  ;;  %1023 = vadd.xlane.f32.xlu1 %v1022_v52 }
 0x40c   : > { %v793_v57 = vsel %vm517_vm5, %v792_v55, %v775_v47  ;;  %v795_v58 = vsel %vm517_vm5, %v787_v48, %v794_v56  ;;  %v804_v59 = vrot.slane %v791_v54, 4  ;;  %v806_v60 = vrot.slane %v779_v53, 4 }
 0x40d   : > { %v799_v62 = vperm.slane %v793_v57, %v2124_v61  ;;  %v803_v63 = vperm.slane %v795_v58, %v2124_v61 }
 0x40e   : > { %v805_v1 = vsel %vm517_vm5, %v804_v59, %v779_v53  ;;  %v807_v2 = vsel %vm517_vm5, %v791_v54, %v806_v60 }
 0x40f   : > { %v811_v3 = vperm.slane %v805_v1, %v2124_v61  ;;  %v815_v5 = vperm.slane %v807_v2, %v2124_v61  ;;  %v816_v6 = vrot.slane %v799_v62, 4  ;;  %v818_v7 = vrot.slane %v803_v63, 4 }
 0x411   : > { %v819_v8 = vsel %vm517_vm5, 0.0, %v818_v7  ;;  %v820_v9 = vrot.slane %v811_v3, 4  ;;  %v822_v10 = vrot.slane %v815_v5, 4  ;;  %v824_v11 = vsel %vm517_vm5, %v818_v7, %v799_v62 }
 0x412   : > { %v829_v12 = vrot.slane %v819_v8, 4  ;;  %v817_v4 = vsel %vm517_vm5, 0.0, %v816_v6  ;;  %v828_v14 = vperm.slane %v824_v11, %v2117_v49 }
 0x413   : > { %v823_v13 = vsel %vm517_vm5, 0.0, %v822_v10  ;;  %v835_v15 = vsel %vm517_vm5, %v822_v10, %v811_v3  ;;  %v821_v19 = vsel %vm517_vm5, 0.0, %v820_v9 }
 0x414   : > { %v840_v16 = vrot.slane %v823_v13, 4  ;;  %v830_v17 = vsel %vm517_vm5, %v829_v12, %v817_v4  ;;  %v839_v18 = vperm.slane %v835_v15, %v2117_v49  ;;  %v848_v21 = vrot.slane %v828_v14, 4 }
 0x415   : > { %v834_v20 = vperm.slane %v830_v17, %v2117_v49 }
 0x416   : > { %v841_v22 = vsel %vm517_vm5, %v840_v16, %v821_v19  ;;  %v860_v23 = vrot.slane %v839_v18, 4 }
 0x417   : > { %v845_v24 = vperm.slane %v841_v22, %v2117_v49  ;;  %v849_v25 = vsel %vm517_vm5, %v834_v20, %v848_v21  ;;  %v846_v35 = vrot.slane %v834_v20, 4 }
 0x418   : > { %v857_v37 = vperm.slane %v849_v25, %v2124_v61 }
 0x419   : > { %v861_v38 = vsel %vm517_vm5, %v845_v24, %v860_v23  ;;  %v847_v28 = vsel %vm517_vm5, %v846_v35, %v828_v14  ;;  %v858_v29 = vrot.slane %v845_v24, 4 }
 0x41a   : > { %v869_v30 = vperm.slane %v861_v38, %v2124_v61  ;;  %v876_v31 = vrot.slane %v857_v37, 4  ;;  %v853_v32 = vperm.slane %v847_v28, %v2124_v61 }
 0x41b   : > { %v859_v33 = vsel %vm517_vm5, %v858_v29, %v839_v18 }
 0x41c   : > { %v877_v34 = vsel %vm517_vm5, %v869_v30, %v876_v31  ;;  %v865_v36 = vperm.slane %v859_v33, %v2124_v61  ;;  %v872_v40 = vrot.slane %v853_v32, 4  ;;  %v874_v41 = vrot.slane %v869_v30, 4 }
 0x41d   : > { %1124 = vmatpush.msra.mxu1 %v877_v34 }
 0x41e   : > { %v873_v43 = vsel %vm517_vm5, %v865_v36, %v872_v40  ;;  %v875_v44 = vsel %vm517_vm5, %v874_v41, %v857_v37  ;;  %v870_v45 = vrot.slane %v865_v36, 4 }
 0x41f   : > { %1078 = vmatpush.msrb.mxu3 %v873_v43  ;;  %1101 = vmatpush.msrb.mxu0 %v875_v44 }
 0x420   : > { %v871_v46 = vsel %vm517_vm5, %v870_v45, %v853_v32 }
 0x421   : > { %1055 = vmatpush.msrb.mxu2 %v871_v46 }
 0x46d   : > { %v1015_v47 = vpop.xlane.xlu1 %1014 }
 0x46e   : > { %1628 = vrcp.f32 %v1015_v47 }
 0x472   : > { %v1021_v48 = vpop.xlane.xlu0 %1020 }
 0x473   : > { %1630 = vrcp.f32 %v1021_v48 }
 0x474   : > { %v1629_v50 = vpop.eup %1628 }
 0x475   : > { %v1018_v51 = vpop.xlane.xlu1 %1017  ;;  %v1029_v52 = vmul.f32 %v1629_v50, %v2217_v26 }
 0x476   : > { %1632 = vrcp.f32 %v1018_v51 }
 0x477   : > { %1033 = vst.msk [vmem:[%s2275_s14] sm:$0xff] %vm878_vm6, %v1029_v52  ;;  %1498 = vmatmul.msk.f32.vlgmr.msrb.gmra.mxu2 %vm878_vm6, %v1029_v52 }
 0x479   : > { %v1631_v53 = vpop.eup %1630 }
 0x47a   : > { %v1031_v54 = vmul.f32 %v1631_v53, %v2221_v39 }
 0x47c   : > { %v1633_v55 = vpop.eup %1632  ;;  %1035 = vst.msk [vmem:[%s2275_s14 + $0x10] sm:$0xff] %vm878_vm6, %v1031_v54  ;;  %1500 = vmatmul.msk.f32.vlgmr.msrb.gmra.mxu0 %vm878_vm6, %v1031_v54 }
 0x47d   : > { %v1024_v26 = vpop.xlane.xlu1 %1023  ;;  %v1030_v56 = vmul.f32 %v1633_v55, %v2223_v27 }
 0x47e   : > { %1634 = vrcp.f32 %v1024_v26 }
 0x47f   : > { %1034 = vst.msk [vmem:[%s2275_s14 + $0x8] sm:$0xff] %vm878_vm6, %v1030_v56  ;;  %1499 = vmatmul.msk.f32.vlgmr.msrb.gmra.mxu3 %vm878_vm6, %v1030_v56 }
 0x484   : > { %v1635_v57 = vpop.eup %1634 }
 0x485   : > { %v1032_v58 = vmul.f32 %v1635_v57, %v2229_v42 }
 0x487   : > { %1036 = vst.msk [vmem:[%s2275_s14 + $0x18] sm:$0xff] %vm878_vm6, %v1032_v58  ;;  %1501 = vmatmul.msk.f32.vlgmr.msra.gmra.mxu1 %vm878_vm6, %v1032_v58 }
 0x4f9   : > { %v1103_v39 = vpop.f32.mrf.mxu0 }
 0x4fa   : > { %v1057_v59 = vpop.f32.mrf.mxu2  ;;  %v1129_v62 = vrot.slane %v1103_v39, 4 }
 0x4fb   : > { %v1131_v60 = vrot.slane %v1057_v59, 4 }
 0x4fc   : > { %v1130_v27 = vsel %vm517_vm5, %v1129_v62, %v1057_v59 }
 0x4fd   : > { %v1132_v63 = vsel %vm517_vm5, %v1103_v39, %v1131_v60  ;;  %v1136_v5 = vperm.slane %v1130_v27, %v2117_v49  ;;  %v1258_v27 = vld [vmem:[#allocation8 + $0x10] sm:$0xff] }
 0x4fe   : > { %v1140_v1 = vperm.slane %v1132_v63, %v2117_v49  ;;  %v1259_v63 = vld [vmem:[#allocation8 + $0x18] sm:$0xff] }
 0x4ff   : > { %v1155_v11 = vrot.slane %v1136_v5, 4  ;;  %1279 = vmatpush.msra.mxu2 %v1259_v63 }
 0x500   : > { %v1167_v8 = vrot.slane %v1140_v1, 4 }
 0x501   : > { %1280 = vmatpush.msra.mxu2 %v1258_v27 }
 0x502   : > { %v1080_v2 = vpop.f32.mrf.mxu3 }
 0x503   : > { %v1143_v3 = vrot.slane %v1080_v2, 4 }
 0x504   : > { %v1126_v6 = vpop.f32.mrf.mxu1 }
 0x505   : > { %v1141_v42 = vrot.slane %v1126_v6, 4  ;;  %v1144_v7 = vsel %vm517_vm5, %v1126_v6, %v1143_v3 }
 0x506   : > { %v1152_v9 = vperm.slane %v1144_v7, %v2117_v49 }
 0x507   : > { %v1142_v10 = vsel %vm517_vm5, %v1141_v42, %v1080_v2 }
 0x508   : > { %v1148_v12 = vperm.slane %v1142_v10, %v2117_v49  ;;  %v1165_v4 = vrot.slane %v1152_v9, 4  ;;  %v1168_v13 = vsel %vm517_vm5, %v1152_v9, %v1167_v8 }
 0x509   : > { %v1176_v14 = vperm.slane %v1168_v13, %v2124_v61 }
 0x50a   : > { %v1153_v15 = vrot.slane %v1148_v12, 4  ;;  %v1156_v16 = vsel %vm517_vm5, %v1148_v12, %v1155_v11  ;;  %v1166_v17 = vsel %vm517_vm5, %v1165_v4, %v1140_v1  ;;  %v1256_v1 = vld [vmem:[#allocation8] sm:$0xff] }
 0x50b   : > { %v1164_v18 = vperm.slane %v1156_v16, %v2124_v61  ;;  %v1172_v19 = vperm.slane %v1166_v17, %v2124_v61  ;;  %v1183_v20 = vrot.slane %v1176_v14, 4 }
 0x50c   : > { %v1154_v21 = vsel %vm517_vm5, %v1153_v15, %v1136_v5 }
 0x50d   : > { %v1160_v22 = vperm.slane %v1154_v21, %v2124_v61  ;;  %v1179_v23 = vrot.slane %v1164_v18, 4  ;;  %v1181_v24 = vrot.slane %v1172_v19, 4  ;;  %v1184_v25 = vsel %vm517_vm5, 0.0, %v1183_v20 }
 0x50e   : > { %v1196_v35 = vsel %vm517_vm5, %v1183_v20, %v1172_v19  ;;  %v1201_v37 = vrot.slane %v1184_v25, 4 }
 0x50f   : > { %v1177_v38 = vrot.slane %v1160_v22, 4  ;;  %v1180_v28 = vsel %vm517_vm5, 0.0, %v1179_v23  ;;  %v1182_v29 = vsel %vm517_vm5, 0.0, %v1181_v24  ;;  %v1200_v30 = vperm.slane %v1196_v35, %v2117_v49 }
 0x510   : > { %v1190_v31 = vrot.slane %v1180_v28, 4  ;;  %v1185_v32 = vsel %vm517_vm5, %v1179_v23, %v1160_v22  ;;  %v1202_v33 = vsel %vm517_vm5, %v1201_v37, %v1182_v29 }
 0x511   : > { %v1178_v34 = vsel %vm517_vm5, 0.0, %v1177_v38  ;;  %v1189_v36 = vperm.slane %v1185_v32, %v2117_v49  ;;  %v1206_v40 = vperm.slane %v1202_v33, %v2117_v49  ;;  %v1221_v41 = vrot.slane %v1200_v30, 4 }
 0x512   : > { %v1191_v43 = vsel %vm517_vm5, %v1190_v31, %v1178_v34 }
 0x513   : > { %v1195_v44 = vperm.slane %v1191_v43, %v2117_v49  ;;  %v1209_v45 = vrot.slane %v1189_v36, 4  ;;  %v1222_v46 = vsel %vm517_vm5, %v1206_v40, %v1221_v41  ;;  %v1219_v47 = vrot.slane %v1206_v40, 4 }
 0x514   : > { %v1230_v48 = vperm.slane %v1222_v46, %v2124_v61 }
 0x515   : > { %v1210_v50 = vsel %vm517_vm5, %v1195_v44, %v1209_v45  ;;  %v1207_v51 = vrot.slane %v1195_v44, 4  ;;  %v1220_v52 = vsel %vm517_vm5, %v1219_v47, %v1200_v30 }
 0x516   : > { %v1218_v53 = vperm.slane %v1210_v50, %v2124_v61  ;;  %v1235_v54 = vrot.slane %v1230_v48, 4  ;;  %v1226_v55 = vperm.slane %v1220_v52, %v2124_v61 }
 0x517   : > { %v1208_v26 = vsel %vm517_vm5, %v1207_v51, %v1189_v36 }
 0x518   : > { %v1236_v49 = vsel %vm517_vm5, %v1235_v54, %v1218_v53  ;;  %v1214_v56 = vperm.slane %v1208_v26, %v2124_v61  ;;  %v1231_v57 = vrot.slane %v1226_v55, 4  ;;  %v1237_v60 = vrot.slane %v1218_v53, 4  ;;  %v1257_v61 = vld [vmem:[#allocation8 + $0x8] sm:$0xff] }
 0x519   : > { %1244 = vrot.lane.b32.xlu1 %v1236_v49, %s1880_s19  ;;  %1281 = vmatpush.msra.mxu2 %v1257_v61 }
 0x51a   : > { %v1233_v58 = vrot.slane %v1214_v56, 4  ;;  %v1232_v39 = vsel %vm517_vm5, %v1231_v57, %v1214_v56  ;;  %v1238_v62 = vsel %vm517_vm5, %v1230_v48, %v1237_v60 }
 0x51b   : > { %1282 = vmatpush.msra.mxu2 %v1256_v1 }
 0x51c   : > { %v1234_v59 = vsel %vm517_vm5, %v1226_v55, %v1233_v58 }
 0x51d   : > { %1240 = vrot.lane.b32.xlu2 %v1234_v59, %s1881_s4 }
 0x525   : > { %1248 = vrot.lane.b32.xlu2 %v1238_v62, %s1882_s8 }
 0x577   : > { %v1241_v2 = vpop.permute.xlu2 %1240 }
 0x578   : > { %v1251_v3 = vsel %vm878_vm6, %v1232_v39, %v1241_v2 }
 0x57f   : > { %v1249_v6 = vpop.permute.xlu2 %1248 }
 0x58b   : > { %v1245_v5 = vpop.permute.xlu1 %1244 }
 0x58c   : > { %v1253_v42 = vsel %vm1252_vm7, %v1251_v3, %v1245_v5 }
 0x58d   : > { %v1255_v7 = vsel %vm1254_vm8, %v1253_v42, %v1249_v6 }
 0x58e   : > { %1502 = vmatmul.msk.f32.vlgmr.msra.gmra.mxu2 %vm434_vm0, %v1255_v7 }
 0x58f   : > { %1783 = shalt.err (!%p1780_p8)
}
 0x590   : > { %s1883_s14 = smov 128   ;;  %s1505_s19 = sshll.u32 %s1958_s16, 3  ;;  %v1615_v8 = vld [vmem:[%s2399_s7] ss:$0 sm:$0xff] }
 0x591   : > { %1524 = dma.vmem_to_hbm [thread:$0]  (%p2005_p4), %s1323_s26, 512, %s1325_s22, %s1296_s28, %s1883_s14, %s1883_s14, %s1881_s4  }
 0x592   : > { %s2424_s18 = sld [smem:[#allocation26_spill]]  ;;  %s425_s23 = scalar_lea.vmem [#allocation10], %s1483_s30 }
 0x593   : > { %s1308_s11 = sshll.u32 %s425_s23, 4  ;;  %s1291_s16 = scalar_lea.sflag [#allocation4], %s2058_s6  ;;  %s1309_s11 = int_to_ptr.vmem [resolvable:$true] %s1308_s11 }
 0x598   : > { %s1306_s21 = scalar_lea.hbm %s2424_s18, %s1505_s19  ;;  %s1804_s30 = scalar_lea.hbm %s2424_s18, 16 }
 0x599   : > { %s1310_s29 = sshll.u32 %s1306_s21, 4  ;;  %s1311_s29 = int_to_ptr.hbm [resolvable:$true] %s1310_s29 }
 0x59a   : > { %s1798_s4 = sshra.s32 %s1311_s29, 4  ;;  %s1799_s4 = int_to_ptr.hbm [resolvable:$true] %s1798_s4 }
 0x59b   : > { %s1800_s26 = scalar_lea.hbm %s1799_s4, 8  ;;  %p1805_p0 = scmp.lt.s32.totalorder %s1799_s4, %s2424_s18 }
 0x59c   : > { %p1801_p10 = scmp.ne.s32.totalorder %s1799_s4, %s1800_s26  ;;  %p1806_p2 = scmp.lt.s32.totalorder %s1804_s30, %s1800_s26 }
 0x59e   : > { %p1802_p13 = pnand %p1801_p10, %p2005_p4  ;;  %p1807_p1 = por %p1806_p2, %p1805_p0 }
 0x5a0   : > { %p1803_p11 = pneg %p1802_p13 }
 0x5a2   : > { %p1808_p3 = pnand %p1807_p1, %p1803_p11 }
 0x611   : > { %v1284_v9 = vpop.f32.mrf.mxu2 }
 0x612   : > { %v1285_v10 = vadd.f32 %v1615_v8, %v1284_v9 }
 0x614   : > { %v1288_v11 = vadd.f32 %v1285_v10, %v2084_v0 }
 0x616   : > { %1289 = vst.msk [vmem:[%s425_s23] sm:$0xff] %vm434_vm0, %v1288_v11 }
 0x617   : > { %1811 = shalt.err (!%p1808_p3)
}
 0x618   : > { %1523 = dma.vmem_to_hbm [thread:$0]  (%p2005_p4), %s1309_s11, 128, %s1311_s29, %s1291_s16  }
 0x619 PF: > { %s2425_s6 = sld [smem:[#allocation19_spill]]  ;;  %p2427_p12 = scmp.ge.s32.totalorder %s1866_s12, 2 }
 0x61b   : > { %p1542_p7 = pnand %p2427_p12, %p2009_p6 }
 0x61d   : > { %p1543_p9 = pneg %p1542_p7 }
 0x61f   : > { %s1339_s14 = sand.u32 1, %s2425_s6  }
 0x620   : > { %s1340_s19 = scalar_lea.sflag [#allocation4], %s1339_s14 }
 0x621   : > { %1845 = dma.done.wait (%p1543_p9), %s1340_s19, 128  }
 0x622   : > { %1847 = vsyncadd (%p1543_p9), %s1340_s19, 4294967168  ;;  %s1350_s8 = scalar_lea.sflag [#allocation12], %s1339_s14 }
 0x623   : > { %1849 = dma.done.wait (%p1543_p9), %s1350_s8, 512  }
 0x624   : > { %1851 = vsyncadd (%p1543_p9), %s1350_s8, 4294966784  ;;  %s2428_s12 = sld [smem:[#allocation21_spill]]  ;;  %s2431_s30 = smov %s1858_s10 }
 0x625   : > { %s2429_s17 = sld [smem:[#allocation20_spill]] }
 0x626   : > { %s2430_s11 = sld [smem:[#allocation22_spill]] }
 0x62a   : > { %p30_p4 = scmp.ge.s32.totalorder %s2428_s12, 4  }
 0x62b   : > { %s2432_s10 = smov %s2429_s17 }
 0x62c   :  { %32 = sbr.rel (!%p30_p4) target bundleno = 14 (0xe), region = 135 }
 0x631   :  { %1356 = vsyncpa [#allocation3], 1 }
 0x632   :  { %1358 = vsyncpa [#allocation3 + $0x1], 1 }
 0x633   :  { %1359 = vsyncpa [#allocation6], 1 }
 0x634   :  { %1361 = vsyncpa [#allocation6 + $0x1], 1 }
 0x635   :  { %1362 = vsyncpa [#allocation9], 1 }
 0x636   :  { %1363 = vsyncpa [#allocation4], 1 }
 0x637   :  { %1365 = vsyncpa [#allocation4 + $0x1], 1 }
 0x638   :  { %1366 = vsyncpa [#allocation12], 1 }
 0x639   :  { %1368 = vsyncpa [#allocation12 + $0x1], 1 }

</bundles_post_ra>
